<compile_context>
chip_gen: v6e
topology: v6e:2x2x1
jax: 0.10.0
libtpu: 0.0.40
codegen_flags: <defaults>
</compile_context>

<pallas_src>
import functools

import jax
import jax.numpy as jnp
from jax.experimental import pallas as pl
from jax.experimental.pallas import tpu as pltpu


# ---------------------------------------------------------------------------
# in-kernel math helpers
# ---------------------------------------------------------------------------
def _erf(x):
    # Abramowitz & Stegun 7.1.26 polynomial approximation of erf (|err|<1.5e-7)
    a1, a2, a3, a4, a5 = (0.254829592, -0.284496736, 1.421413741,
                          -1.453152027, 1.061405429)
    p = 0.3275911
    sgn = jnp.where(x >= 0.0, 1.0, -1.0)
    ax = jnp.abs(x)
    # Divide -> approximate EUP reciprocal: exp and rcp share the (otherwise
    # idle) EUP slot, keeping the VALU free for the polynomial FMAs.
    t = pl.reciprocal(1.0 + p * ax, approx=True)
    poly = ((((a5 * t + a4) * t + a3) * t + a2) * t + a1) * t
    return sgn * (1.0 - poly * jnp.exp(-ax * ax))


def _gelu(x):  # exact GELU (PyTorch nn.GELU default, erf form)
    return 0.5 * x * (1.0 + _erf(x * 0.7071067811865476))


# ---------------------------------------------------------------------------
# fused SelectGlu kernel (one grid step processes b_tile images)
# ---------------------------------------------------------------------------
def selectglu_kernel(x_ref, w1a_ref, b1a_ref, w1b_ref, b1b_ref,
                     wk_ref, mk_ref, bdw_ref, w2_ref, b2_ref, o_ref,
                     *, shifts):
    """x_ref: (C, L) with L = b_tile*HW (batch folded into the lane axis)."""
    x = x_ref[...]

    # fc1 with inputNorm folded in, pre-split into the two chunk() halves.
    # Layout (cout, K) x (K, L): output lanes carry tokens -> lane-dense.
    xh = jnp.dot(w1a_ref[...], x,
                 preferred_element_type=jnp.float32) + b1a_ref[...]   # (hid, L)
    v = jnp.dot(w1b_ref[...], x,
                preferred_element_type=jnp.float32) + b1b_ref[...]    # (hid, L)

    # Depthwise 3x3 conv (padding=1, bias): each tap = one XLU lane rotation
    # + boundary-mask multiply + per-channel FMA.  The center tap (shift 0,
    # mask all-ones) initializes the accumulator together with the bias.
    dw = bdw_ref[...] + wk_ref[4] * xh
    for k, s in enumerate(shifts):
        if k == 4:
            continue
        rolled = pltpu.roll(xh, shift=s, axis=1)   # rolled[:,p] = xh[:,(p+off)%L]
        dw = dw + wk_ref[k] * (mk_ref[k] * rolled)

    g = _gelu(dw) * v                                   # GLU gate (drop=0.0)
    out = jnp.dot(w2_ref[...], g.astype(w2_ref.dtype),
                  preferred_element_type=jnp.float32) + b2_ref[...]   # (Cout, L)
    o_ref[...] = out.astype(o_ref.dtype)                # lane-dense store


# ---------------------------------------------------------------------------
# parameter construction and folding (all done once, outside the kernel)
# ---------------------------------------------------------------------------
def init_params(key, in_features, hidden_features=None, out_features=None):
    out_features = out_features or in_features
    hidden_features = hidden_features or in_features
    hid = int(2 * hidden_features / 3)
    ks = jax.random.split(key, 10)
    return dict(
        hid=hid,
        bn_gamma=1.0 + 0.1 * jax.random.normal(ks[0], (in_features,), jnp.float32),
        bn_beta=0.1 * jax.random.normal(ks[1], (in_features,), jnp.float32),
        bn_mean=0.1 * jax.random.normal(ks[2], (in_features,), jnp.float32),
        bn_var=1.0 + 0.1 * jax.random.uniform(ks[3], (in_features,), jnp.float32),
        fc1_w=0.3 * jax.random.normal(ks[4], (2 * hid, in_features), jnp.float32),
        fc1_b=0.1 * jax.random.normal(ks[5], (2 * hid,), jnp.float32),
        dw_w=0.3 * jax.random.normal(ks[6], (hid, 3, 3), jnp.float32),
        dw_b=0.1 * jax.random.normal(ks[7], (hid,), jnp.float32),
        fc2_w=0.3 * jax.random.normal(ks[8], (out_features, hid), jnp.float32),
        fc2_b=0.1 * jax.random.normal(ks[9], (out_features,), jnp.float32),
    )


def fold_params(p, H, W, eps=1e-5, matmul_dtype=jnp.float32):
    """Fold BN into fc1, split fc1 into its chunk halves, and factor the
    depthwise taps into per-tap channel weights (9,hid,1) + per-tap position
    masks (9,1,HW) (no dense hid x HW slab)."""
    hid = p["hid"]
    HW = H * W
    s = p["bn_gamma"] / jnp.sqrt(p["bn_var"] + eps)        # BN scale  (C,)
    t = p["bn_beta"] - p["bn_mean"] * s                    # BN shift  (C,)
    w1_eff = p["fc1_w"] * s[None, :]                       # (2*hid, C)
    b1_eff = p["fc1_b"] + (p["fc1_w"] * t[None, :]).sum(axis=1)

    pos = jnp.arange(HW)
    row, col = pos // W, pos % W
    wk, mk = [], []
    for dy in (-1, 0, 1):
        for dx in (-1, 0, 1):
            wk.append(p["dw_w"][:, dy + 1, dx + 1][:, None])        # (hid, 1)
            valid = ((row + dy >= 0) & (row + dy < H) &
                     (col + dx >= 0) & (col + dx < W)).astype(jnp.float32)
            mk.append(valid[None, :])                               # (1, HW)

    return dict(
        w1a=w1_eff[:hid].astype(matmul_dtype), b1a=b1_eff[:hid, None],
        w1b=w1_eff[hid:].astype(matmul_dtype), b1b=b1_eff[hid:, None],
        wk=jnp.stack(wk, axis=0),           # (9, hid, 1) channel weights (f32)
        mk=jnp.stack(mk, axis=0),           # (9, 1, HW)  boundary masks  (f32)
        bdw=p["dw_b"][:, None],
        w2=p["fc2_w"].astype(matmul_dtype), b2=p["fc2_b"][:, None],
    )


# ---------------------------------------------------------------------------
# pallas_call wrapper
# ---------------------------------------------------------------------------
def _default_b_tile(batch):
    """Images per grid step.  v7x has 2 TensorCores -> keep >=2 parallel grid
    steps so Pallas can shard them; single-TC chips (v5e/v6e) fold everything
    into one step to amortize the ~0.35us per-step overhead."""
    try:
        kind = jax.devices()[0].device_kind.lower()
    except Exception:
        kind = ""
    if ("v7" in kind or "7x" in kind) and batch >= 2 and batch % 2 == 0:
        return batch // 2
    return batch


def selectglu_forward(x, fp, b_tile=None):
    B, C, H, W = x.shape
    HW = H * W
    hid = fp["w1a"].shape[0]
    cout = fp["w2"].shape[0]
    if b_tile is None:
        b_tile = _default_b_tile(B)
    assert B % b_tile == 0, (B, b_tile)
    n_steps = B // b_tile
    L = b_tile * HW                                     # lane width per step

    # NCHW -> (C, B*HW): channels on sublanes, batch folded into the token
    # (lane) axis.  Tiny one-off transpose done by XLA outside the kernel.
    x_cl = x.reshape(B, C, HW).transpose(1, 0, 2).reshape(C, B * HW)
    x_cl = x_cl.astype(fp["w1a"].dtype)

    # Per-tap boundary masks, tiled over the b_tile images of one step.
    mk = jnp.tile(fp["mk"], (1, 1, b_tile))             # (9, 1, L)

    # Roll amounts: rolled[:, p] == xh[:, (p + dy*W + dx) mod L] (left rotate).
    shifts = tuple((-(dy * W + dx)) % L
                   for dy in (-1, 0, 1) for dx in (-1, 0, 1))

    kern = functools.partial(selectglu_kernel, shifts=shifts)
    out = pl.pallas_call(
        kern,
        out_shape=jax.ShapeDtypeStruct((cout, B * HW), jnp.float32),
        grid=(n_steps,),
        in_specs=[
            pl.BlockSpec((C, L), lambda s: (0, s)),          # x (per-step lanes)
            pl.BlockSpec((hid, C), lambda s: (0, 0)),        # fc1 half a
            pl.BlockSpec((hid, 1), lambda s: (0, 0)),
            pl.BlockSpec((hid, C), lambda s: (0, 0)),        # fc1 half b
            pl.BlockSpec((hid, 1), lambda s: (0, 0)),
            pl.BlockSpec((9, hid, 1), lambda s: (0, 0, 0)),  # tap channel weights
            pl.BlockSpec((9, 1, L), lambda s: (0, 0, 0)),    # tap boundary masks
            pl.BlockSpec((hid, 1), lambda s: (0, 0)),        # dw bias
            pl.BlockSpec((cout, hid), lambda s: (0, 0)),     # fc2
            pl.BlockSpec((cout, 1), lambda s: (0, 0)),
        ],
        out_specs=pl.BlockSpec((cout, L), lambda s: (0, s)),
        compiler_params=pltpu.CompilerParams(
            dimension_semantics=("parallel",)),
        # TODO(synk): for large H*W, add a token-tile grid axis with 1-row
        # halos for the taps and set vmem_limit_bytes explicitly; on v7x
        # (64 MiB VMEM) use roughly half the v6e token tile and overwrite dw
        # in place with the GELU result so only two hid x L_tile
        # intermediates stay live.
    )(x_cl, fp["w1a"], fp["b1a"], fp["w1b"], fp["b1b"],
      fp["wk"], mk, fp["bdw"], fp["w2"], fp["b2"])

    return out.reshape(cout, B, HW).transpose(1, 0, 2).reshape(B, cout, H, W)


# ---------------------------------------------------------------------------
# pure-JAX reference (token-major, mirrors the PyTorch forward)
# ---------------------------------------------------------------------------
def reference_forward(x, p, eps=1e-5):
    B, C, H, W = x.shape
    hid = p["hid"]
    hi = jax.lax.Precision.HIGHEST
    s = p["bn_gamma"] / jnp.sqrt(p["bn_var"] + eps)
    t = p["bn_beta"] - p["bn_mean"] * s
    xb = x * s[None, :, None, None] + t[None, :, None, None]      # inputNorm
    tok = xb.reshape(B, C, H * W).transpose(0, 2, 1)              # to_3d
    y = jnp.matmul(tok, p["fc1_w"].T, precision=hi) + p["fc1_b"]  # fc1
    xh, v = y[..., :hid], y[..., hid:]                            # chunk(2)
    xh4 = xh.transpose(0, 2, 1).reshape(B, hid, H, W)             # to_4d
    xp = jnp.pad(xh4, ((0, 0), (0, 0), (1, 1), (1, 1)))
    dw = jnp.zeros_like(xh4)
    for u in range(3):
        for w_ in range(3):
            dw = dw + p["dw_w"][None, :, u, w_, None, None] * xp[:, :, u:u + H, w_:w_ + W]
    dw = dw + p["dw_b"][None, :, None, None]                      # dwconv
    dw3 = dw.reshape(B, hid, H * W).transpose(0, 2, 1)            # to_3d
    g = jax.nn.gelu(dw3, approximate=False) * v                   # act * v
    out = jnp.matmul(g, p["fc2_w"].T, precision=hi) + p["fc2_b"]  # fc2
    return out.transpose(0, 2, 1).reshape(B, -1, H, W)            # to_4d


if __name__ == "__main__":
    key = jax.random.PRNGKey(0)
    kx, kp = jax.random.split(key)
    B, C, H, W = 2, 4, 16, 16           # in_features = 4 -> hidden = 2
    x = jax.random.normal(kx, (B, C, H, W), jnp.float32)
    params = init_params(kp, in_features=C)
    ref = reference_forward(x, params)

    # f32 path, both grid layouts: fully folded single step (v5e/v6e style)
    # and 2 parallel steps (v7x / 2-TensorCore style).  Also validates that
    # the batch-folded boundary masks are correct with B > 1.
    folded = fold_params(params, H, W)
    for bt in (B, 1):
        fwd = jax.jit(functools.partial(selectglu_forward, fp=folded, b_tile=bt))
        out = jax.block_until_ready(fwd(x))
        assert out.shape == (B, C, H, W), out.shape
        assert bool(jnp.all(jnp.isfinite(out)))
        err = float(jnp.max(jnp.abs(out - ref)))
        # Headroom for the approximate EUP reciprocal inside erf and MXU
        # accumulation-order differences; any structural bug (taps, masks,
        # roll direction, batch fold, BN fold) would be orders larger.
        assert err < 1e-2, f"f32 b_tile={bt}: max abs err {err}"

    # bf16 matmul-operand storage (v6e/v7x: halves HBM bytes, 2x MXU rate);
    # taps / GELU / accumulation stay f32.
    folded_bf16 = fold_params(params, H, W, matmul_dtype=jnp.bfloat16)
    fwd16 = jax.jit(functools.partial(selectglu_forward, fp=folded_bf16))
    out16 = jax.block_until_ready(fwd16(x))
    assert out16.shape == (B, C, H, W), out16.shape
    assert bool(jnp.all(jnp.isfinite(out16)))
    err16 = float(jnp.max(jnp.abs(out16 - ref)))
    assert err16 < 1e-1, f"bf16: max abs err {err16}"

    print("KERNEL_OK")
</pallas_src>

<mosaic_0001>
module attributes {stable_mosaic.version = 11 : i64} {
  func.func @selectglu_kernel(%arg0: i32, %arg1: memref<4x512xf32, #tpu.memory_space<vmem>>, %arg2: memref<2x4xf32, #tpu.memory_space<vmem>>, %arg3: memref<2x1xf32, #tpu.memory_space<vmem>>, %arg4: memref<2x4xf32, #tpu.memory_space<vmem>>, %arg5: memref<2x1xf32, #tpu.memory_space<vmem>>, %arg6: memref<9x2x1xf32, #tpu.memory_space<vmem>>, %arg7: memref<9x1x512xf32, #tpu.memory_space<vmem>>, %arg8: memref<2x1xf32, #tpu.memory_space<vmem>>, %arg9: memref<4x2xf32, #tpu.memory_space<vmem>>, %arg10: memref<4x1xf32, #tpu.memory_space<vmem>>, %arg11: memref<4x512xf32, #tpu.memory_space<vmem>>) attributes {dimension_semantics = [#tpu.dimension_semantics<parallel>], iteration_bounds = array<i64: 1>, scalar_prefetch = 0 : i64, scratch_operands = 0 : i64, tpu.core_type = #tpu.core_type<tc>, window_params = [{transform_indices = @transform_0, window_bounds = array<i64: 4, 512>}, {pipeline_mode = #tpu.pipeline_mode<synchronous>, transform_indices = @transform_1, window_bounds = array<i64: 2, 4>}, {pipeline_mode = #tpu.pipeline_mode<synchronous>, transform_indices = @transform_2, window_bounds = array<i64: 2, 1>}, {pipeline_mode = #tpu.pipeline_mode<synchronous>, transform_indices = @transform_3, window_bounds = array<i64: 2, 4>}, {pipeline_mode = #tpu.pipeline_mode<synchronous>, transform_indices = @transform_4, window_bounds = array<i64: 2, 1>}, {pipeline_mode = #tpu.pipeline_mode<synchronous>, transform_indices = @transform_5, window_bounds = array<i64: 9, 2, 1>}, {pipeline_mode = #tpu.pipeline_mode<synchronous>, transform_indices = @transform_6, window_bounds = array<i64: 9, 1, 512>}, {pipeline_mode = #tpu.pipeline_mode<synchronous>, transform_indices = @transform_7, window_bounds = array<i64: 2, 1>}, {pipeline_mode = #tpu.pipeline_mode<synchronous>, transform_indices = @transform_8, window_bounds = array<i64: 4, 2>}, {pipeline_mode = #tpu.pipeline_mode<synchronous>, transform_indices = @transform_9, window_bounds = array<i64: 4, 1>}, {transform_indices = @transform_10, window_bounds = array<i64: 4, 512>}]} {
    %c0 = arith.constant 0 : index
    %c0_0 = arith.constant 0 : index
    %0 = vector.load %arg1[%c0, %c0_0] : memref<4x512xf32, #tpu.memory_space<vmem>>, vector<4x512xf32>
    %c0_1 = arith.constant 0 : index
    %c0_2 = arith.constant 0 : index
    %1 = vector.load %arg2[%c0_1, %c0_2] : memref<2x4xf32, #tpu.memory_space<vmem>>, vector<2x4xf32>
    %cst = arith.constant dense<0.000000e+00> : vector<2x512xf32>
    %2 = tpu.matmul %1, %0, %cst {dimension_numbers = #tpu.dot_dimension_numbers<[1], [0], [0], [1], [0, 0, 1, 1], [], []>} : vector<2x4xf32>, vector<4x512xf32>, vector<2x512xf32> -> vector<2x512xf32>
    %c0_3 = arith.constant 0 : index
    %c0_4 = arith.constant 0 : index
    %3 = vector.load %arg3[%c0_3, %c0_4] : memref<2x1xf32, #tpu.memory_space<vmem>>, vector<2x1xf32>
    %4 = vector.broadcast %3 : vector<2x1xf32> to vector<2x512xf32>
    %5 = arith.addf %2, %4 : vector<2x512xf32>
    %c0_5 = arith.constant 0 : index
    %c0_6 = arith.constant 0 : index
    %6 = vector.load %arg4[%c0_5, %c0_6] : memref<2x4xf32, #tpu.memory_space<vmem>>, vector<2x4xf32>
    %cst_7 = arith.constant dense<0.000000e+00> : vector<2x512xf32>
    %7 = tpu.matmul %6, %0, %cst_7 {dimension_numbers = #tpu.dot_dimension_numbers<[1], [0], [0], [1], [0, 0, 1, 1], [], []>} : vector<2x4xf32>, vector<4x512xf32>, vector<2x512xf32> -> vector<2x512xf32>
    %c0_8 = arith.constant 0 : index
    %c0_9 = arith.constant 0 : index
    %8 = vector.load %arg5[%c0_8, %c0_9] : memref<2x1xf32, #tpu.memory_space<vmem>>, vector<2x1xf32>
    %9 = vector.broadcast %8 : vector<2x1xf32> to vector<2x512xf32>
    %10 = arith.addf %7, %9 : vector<2x512xf32>
    %c0_10 = arith.constant 0 : index
    %c0_11 = arith.constant 0 : index
    %11 = vector.load %arg8[%c0_10, %c0_11] : memref<2x1xf32, #tpu.memory_space<vmem>>, vector<2x1xf32>
    %c4 = arith.constant 4 : index
    %c0_12 = arith.constant 0 : index
    %c0_13 = arith.constant 0 : index
    %12 = vector.load %arg6[%c4, %c0_12, %c0_13] : memref<9x2x1xf32, #tpu.memory_space<vmem>>, vector<1x2x1xf32>
    %13 = vector.shape_cast %12 : vector<1x2x1xf32> to vector<2x1xf32>
    %14 = vector.broadcast %13 : vector<2x1xf32> to vector<2x512xf32>
    %15 = arith.mulf %14, %5 : vector<2x512xf32>
    %16 = vector.broadcast %11 : vector<2x1xf32> to vector<2x512xf32>
    %17 = arith.addf %16, %15 : vector<2x512xf32>
    %c17_i32 = arith.constant 17 : i32
    %18 = tpu.dynamic_rotate %5 by %c17_i32 dim 1 : vector<2x512xf32>, i32 -> vector<2x512xf32>
    %c0_14 = arith.constant 0 : index
    %c0_15 = arith.constant 0 : index
    %c0_16 = arith.constant 0 : index
    %19 = vector.load %arg6[%c0_14, %c0_15, %c0_16] : memref<9x2x1xf32, #tpu.memory_space<vmem>>, vector<1x2x1xf32>
    %20 = vector.shape_cast %19 : vector<1x2x1xf32> to vector<2x1xf32>
    %c0_17 = arith.constant 0 : index
    %c0_18 = arith.constant 0 : index
    %c0_19 = arith.constant 0 : index
    %21 = vector.load %arg7[%c0_17, %c0_18, %c0_19] : memref<9x1x512xf32, #tpu.memory_space<vmem>>, vector<1x1x512xf32>
    %22 = vector.shape_cast %21 : vector<1x1x512xf32> to vector<1x512xf32>
    %23 = vector.broadcast %22 : vector<1x512xf32> to vector<2x512xf32>
    %24 = arith.mulf %23, %18 : vector<2x512xf32>
    %25 = vector.broadcast %20 : vector<2x1xf32> to vector<2x512xf32>
    %26 = arith.mulf %25, %24 : vector<2x512xf32>
    %27 = arith.addf %17, %26 : vector<2x512xf32>
    %c16_i32 = arith.constant 16 : i32
    %28 = tpu.dynamic_rotate %5 by %c16_i32 dim 1 : vector<2x512xf32>, i32 -> vector<2x512xf32>
    %c1 = arith.constant 1 : index
    %c0_20 = arith.constant 0 : index
    %c0_21 = arith.constant 0 : index
    %29 = vector.load %arg6[%c1, %c0_20, %c0_21] : memref<9x2x1xf32, #tpu.memory_space<vmem>>, vector<1x2x1xf32>
    %30 = vector.shape_cast %29 : vector<1x2x1xf32> to vector<2x1xf32>
    %c1_22 = arith.constant 1 : index
    %c0_23 = arith.constant 0 : index
    %c0_24 = arith.constant 0 : index
    %31 = vector.load %arg7[%c1_22, %c0_23, %c0_24] : memref<9x1x512xf32, #tpu.memory_space<vmem>>, vector<1x1x512xf32>
    %32 = vector.shape_cast %31 : vector<1x1x512xf32> to vector<1x512xf32>
    %33 = vector.broadcast %32 : vector<1x512xf32> to vector<2x512xf32>
    %34 = arith.mulf %33, %28 : vector<2x512xf32>
    %35 = vector.broadcast %30 : vector<2x1xf32> to vector<2x512xf32>
    %36 = arith.mulf %35, %34 : vector<2x512xf32>
    %37 = arith.addf %27, %36 : vector<2x512xf32>
    %c15_i32 = arith.constant 15 : i32
    %38 = tpu.dynamic_rotate %5 by %c15_i32 dim 1 : vector<2x512xf32>, i32 -> vector<2x512xf32>
    %c2 = arith.constant 2 : index
    %c0_25 = arith.constant 0 : index
    %c0_26 = arith.constant 0 : index
    %39 = vector.load %arg6[%c2, %c0_25, %c0_26] : memref<9x2x1xf32, #tpu.memory_space<vmem>>, vector<1x2x1xf32>
    %40 = vector.shape_cast %39 : vector<1x2x1xf32> to vector<2x1xf32>
    %c2_27 = arith.constant 2 : index
    %c0_28 = arith.constant 0 : index
    %c0_29 = arith.constant 0 : index
    %41 = vector.load %arg7[%c2_27, %c0_28, %c0_29] : memref<9x1x512xf32, #tpu.memory_space<vmem>>, vector<1x1x512xf32>
    %42 = vector.shape_cast %41 : vector<1x1x512xf32> to vector<1x512xf32>
    %43 = vector.broadcast %42 : vector<1x512xf32> to vector<2x512xf32>
    %44 = arith.mulf %43, %38 : vector<2x512xf32>
    %45 = vector.broadcast %40 : vector<2x1xf32> to vector<2x512xf32>
    %46 = arith.mulf %45, %44 : vector<2x512xf32>
    %47 = arith.addf %37, %46 : vector<2x512xf32>
    %c1_i32 = arith.constant 1 : i32
    %48 = tpu.dynamic_rotate %5 by %c1_i32 dim 1 : vector<2x512xf32>, i32 -> vector<2x512xf32>
    %c3 = arith.constant 3 : index
    %c0_30 = arith.constant 0 : index
    %c0_31 = arith.constant 0 : index
    %49 = vector.load %arg6[%c3, %c0_30, %c0_31] : memref<9x2x1xf32, #tpu.memory_space<vmem>>, vector<1x2x1xf32>
    %50 = vector.shape_cast %49 : vector<1x2x1xf32> to vector<2x1xf32>
    %c3_32 = arith.constant 3 : index
    %c0_33 = arith.constant 0 : index
    %c0_34 = arith.constant 0 : index
    %51 = vector.load %arg7[%c3_32, %c0_33, %c0_34] : memref<9x1x512xf32, #tpu.memory_space<vmem>>, vector<1x1x512xf32>
    %52 = vector.shape_cast %51 : vector<1x1x512xf32> to vector<1x512xf32>
    %53 = vector.broadcast %52 : vector<1x512xf32> to vector<2x512xf32>
    %54 = arith.mulf %53, %48 : vector<2x512xf32>
    %55 = vector.broadcast %50 : vector<2x1xf32> to vector<2x512xf32>
    %56 = arith.mulf %55, %54 : vector<2x512xf32>
    %57 = arith.addf %47, %56 : vector<2x512xf32>
    %c511_i32 = arith.constant 511 : i32
    %58 = tpu.dynamic_rotate %5 by %c511_i32 dim 1 : vector<2x512xf32>, i32 -> vector<2x512xf32>
    %c5 = arith.constant 5 : index
    %c0_35 = arith.constant 0 : index
    %c0_36 = arith.constant 0 : index
    %59 = vector.load %arg6[%c5, %c0_35, %c0_36] : memref<9x2x1xf32, #tpu.memory_space<vmem>>, vector<1x2x1xf32>
    %60 = vector.shape_cast %59 : vector<1x2x1xf32> to vector<2x1xf32>
    %c5_37 = arith.constant 5 : index
    %c0_38 = arith.constant 0 : index
    %c0_39 = arith.constant 0 : index
    %61 = vector.load %arg7[%c5_37, %c0_38, %c0_39] : memref<9x1x512xf32, #tpu.memory_space<vmem>>, vector<1x1x512xf32>
    %62 = vector.shape_cast %61 : vector<1x1x512xf32> to vector<1x512xf32>
    %63 = vector.broadcast %62 : vector<1x512xf32> to vector<2x512xf32>
    %64 = arith.mulf %63, %58 : vector<2x512xf32>
    %65 = vector.broadcast %60 : vector<2x1xf32> to vector<2x512xf32>
    %66 = arith.mulf %65, %64 : vector<2x512xf32>
    %67 = arith.addf %57, %66 : vector<2x512xf32>
    %c497_i32 = arith.constant 497 : i32
    %68 = tpu.dynamic_rotate %5 by %c497_i32 dim 1 : vector<2x512xf32>, i32 -> vector<2x512xf32>
    %c6 = arith.constant 6 : index
    %c0_40 = arith.constant 0 : index
    %c0_41 = arith.constant 0 : index
    %69 = vector.load %arg6[%c6, %c0_40, %c0_41] : memref<9x2x1xf32, #tpu.memory_space<vmem>>, vector<1x2x1xf32>
    %70 = vector.shape_cast %69 : vector<1x2x1xf32> to vector<2x1xf32>
    %c6_42 = arith.constant 6 : index
    %c0_43 = arith.constant 0 : index
    %c0_44 = arith.constant 0 : index
    %71 = vector.load %arg7[%c6_42, %c0_43, %c0_44] : memref<9x1x512xf32, #tpu.memory_space<vmem>>, vector<1x1x512xf32>
    %72 = vector.shape_cast %71 : vector<1x1x512xf32> to vector<1x512xf32>
    %73 = vector.broadcast %72 : vector<1x512xf32> to vector<2x512xf32>
    %74 = arith.mulf %73, %68 : vector<2x512xf32>
    %75 = vector.broadcast %70 : vector<2x1xf32> to vector<2x512xf32>
    %76 = arith.mulf %75, %74 : vector<2x512xf32>
    %77 = arith.addf %67, %76 : vector<2x512xf32>
    %c496_i32 = arith.constant 496 : i32
    %78 = tpu.dynamic_rotate %5 by %c496_i32 dim 1 : vector<2x512xf32>, i32 -> vector<2x512xf32>
    %c7 = arith.constant 7 : index
    %c0_45 = arith.constant 0 : index
    %c0_46 = arith.constant 0 : index
    %79 = vector.load %arg6[%c7, %c0_45, %c0_46] : memref<9x2x1xf32, #tpu.memory_space<vmem>>, vector<1x2x1xf32>
    %80 = vector.shape_cast %79 : vector<1x2x1xf32> to vector<2x1xf32>
    %c7_47 = arith.constant 7 : index
    %c0_48 = arith.constant 0 : index
    %c0_49 = arith.constant 0 : index
    %81 = vector.load %arg7[%c7_47, %c0_48, %c0_49] : memref<9x1x512xf32, #tpu.memory_space<vmem>>, vector<1x1x512xf32>
    %82 = vector.shape_cast %81 : vector<1x1x512xf32> to vector<1x512xf32>
    %83 = vector.broadcast %82 : vector<1x512xf32> to vector<2x512xf32>
    %84 = arith.mulf %83, %78 : vector<2x512xf32>
    %85 = vector.broadcast %80 : vector<2x1xf32> to vector<2x512xf32>
    %86 = arith.mulf %85, %84 : vector<2x512xf32>
    %87 = arith.addf %77, %86 : vector<2x512xf32>
    %c495_i32 = arith.constant 495 : i32
    %88 = tpu.dynamic_rotate %5 by %c495_i32 dim 1 : vector<2x512xf32>, i32 -> vector<2x512xf32>
    %c8 = arith.constant 8 : index
    %c0_50 = arith.constant 0 : index
    %c0_51 = arith.constant 0 : index
    %89 = vector.load %arg6[%c8, %c0_50, %c0_51] : memref<9x2x1xf32, #tpu.memory_space<vmem>>, vector<1x2x1xf32>
    %90 = vector.shape_cast %89 : vector<1x2x1xf32> to vector<2x1xf32>
    %c8_52 = arith.constant 8 : index
    %c0_53 = arith.constant 0 : index
    %c0_54 = arith.constant 0 : index
    %91 = vector.load %arg7[%c8_52, %c0_53, %c0_54] : memref<9x1x512xf32, #tpu.memory_space<vmem>>, vector<1x1x512xf32>
    %92 = vector.shape_cast %91 : vector<1x1x512xf32> to vector<1x512xf32>
    %93 = vector.broadcast %92 : vector<1x512xf32> to vector<2x512xf32>
    %94 = arith.mulf %93, %88 : vector<2x512xf32>
    %95 = vector.broadcast %90 : vector<2x1xf32> to vector<2x512xf32>
    %96 = arith.mulf %95, %94 : vector<2x512xf32>
    %97 = arith.addf %87, %96 : vector<2x512xf32>
    %cst_55 = arith.constant 5.000000e-01 : f32
    %98 = vector.broadcast %cst_55 : f32 to vector<2x512xf32>
    %99 = arith.mulf %98, %97 : vector<2x512xf32>
    %cst_56 = arith.constant 0.707106769 : f32
    %100 = vector.broadcast %cst_56 : f32 to vector<2x512xf32>
    %101 = arith.mulf %97, %100 : vector<2x512xf32>
    %cst_57 = arith.constant 0.000000e+00 : f32
    %102 = vector.broadcast %cst_57 : f32 to vector<2x512xf32>
    %103 = arith.cmpf oge, %101, %102 : vector<2x512xf32>
    %cst_58 = arith.constant 1.000000e+00 : f32
    %cst_59 = arith.constant -1.000000e+00 : f32
    %104 = vector.broadcast %cst_58 : f32 to vector<2x512xf32>
    %105 = vector.broadcast %cst_59 : f32 to vector<2x512xf32>
    %106 = arith.select %103, %104, %105 : vector<2x512xi1>, vector<2x512xf32>
    %107 = math.absf %101 : vector<2x512xf32>
    %cst_60 = arith.constant 0.327591091 : f32
    %108 = vector.broadcast %cst_60 : f32 to vector<2x512xf32>
    %109 = arith.mulf %108, %107 : vector<2x512xf32>
    %cst_61 = arith.constant 1.000000e+00 : f32
    %110 = vector.broadcast %cst_61 : f32 to vector<2x512xf32>
    %111 = arith.addf %110, %109 : vector<2x512xf32>
    %112 = tpu.reciprocal %111 {approx = true} : vector<2x512xf32> -> vector<2x512xf32>
    %cst_62 = arith.constant 1.06140542 : f32
    %113 = vector.broadcast %cst_62 : f32 to vector<2x512xf32>
    %114 = arith.mulf %113, %112 : vector<2x512xf32>
    %cst_63 = arith.constant -1.45315206 : f32
    %115 = vector.broadcast %cst_63 : f32 to vector<2x512xf32>
    %116 = arith.addf %114, %115 : vector<2x512xf32>
    %117 = arith.mulf %116, %112 : vector<2x512xf32>
    %cst_64 = arith.constant 1.42141378 : f32
    %118 = vector.broadcast %cst_64 : f32 to vector<2x512xf32>
    %119 = arith.addf %117, %118 : vector<2x512xf32>
    %120 = arith.mulf %119, %112 : vector<2x512xf32>
    %cst_65 = arith.constant -0.284496725 : f32
    %121 = vector.broadcast %cst_65 : f32 to vector<2x512xf32>
    %122 = arith.addf %120, %121 : vector<2x512xf32>
    %123 = arith.mulf %122, %112 : vector<2x512xf32>
    %cst_66 = arith.constant 0.254829586 : f32
    %124 = vector.broadcast %cst_66 : f32 to vector<2x512xf32>
    %125 = arith.addf %123, %124 : vector<2x512xf32>
    %126 = arith.mulf %125, %112 : vector<2x512xf32>
    %cst_67 = arith.constant 0.000000e+00 : f32
    %127 = vector.broadcast %cst_67 : f32 to vector<2x512xf32>
    %128 = arith.subf %127, %107 : vector<2x512xf32>
    %129 = arith.mulf %128, %107 : vector<2x512xf32>
    %130 = math.exp %129 : vector<2x512xf32>
    %131 = arith.mulf %126, %130 : vector<2x512xf32>
    %cst_68 = arith.constant 1.000000e+00 : f32
    %132 = vector.broadcast %cst_68 : f32 to vector<2x512xf32>
    %133 = arith.subf %132, %131 : vector<2x512xf32>
    %134 = arith.mulf %106, %133 : vector<2x512xf32>
    %cst_69 = arith.constant 1.000000e+00 : f32
    %135 = vector.broadcast %cst_69 : f32 to vector<2x512xf32>
    %136 = arith.addf %135, %134 : vector<2x512xf32>
    %137 = arith.mulf %99, %136 : vector<2x512xf32>
    %138 = arith.mulf %137, %10 : vector<2x512xf32>
    %c0_70 = arith.constant 0 : index
    %c0_71 = arith.constant 0 : index
    %139 = vector.load %arg9[%c0_70, %c0_71] : memref<4x2xf32, #tpu.memory_space<vmem>>, vector<4x2xf32>
    %cst_72 = arith.constant dense<0.000000e+00> : vector<4x512xf32>
    %140 = tpu.matmul %139, %138, %cst_72 {dimension_numbers = #tpu.dot_dimension_numbers<[1], [0], [0], [1], [0, 0, 1, 1], [], []>} : vector<4x2xf32>, vector<2x512xf32>, vector<4x512xf32> -> vector<4x512xf32>
    %c0_73 = arith.constant 0 : index
    %c0_74 = arith.constant 0 : index
    %141 = vector.load %arg10[%c0_73, %c0_74] : memref<4x1xf32, #tpu.memory_space<vmem>>, vector<4x1xf32>
    %142 = vector.broadcast %141 : vector<4x1xf32> to vector<4x512xf32>
    %143 = arith.addf %140, %142 : vector<4x512xf32>
    %c0_75 = arith.constant 0 : index
    %c0_76 = arith.constant 0 : index
    %144 = vector.load %arg11[%c0_75, %c0_76] : memref<4x512xf32, #tpu.memory_space<vmem>>, vector<4x512xf32>
    tpu.vector_store %arg11[%c0_75, %c0_76], %143 {strides = array<i32>} : memref<4x512xf32, #tpu.memory_space<vmem>>, vector<4x512xf32>,
    return
  }
  func.func @transform_0(%arg0: i32) -> (i32, i32) {
    %c0_i32 = arith.constant 0 : i32
    %c0_i32_0 = arith.constant 0 : i32
    return %c0_i32, %arg0 : i32, i32
  }
  func.func @transform_1(%arg0: i32) -> (i32, i32) {
    %c0_i32 = arith.constant 0 : i32
    %c0_i32_0 = arith.constant 0 : i32
    %c0_i32_1 = arith.constant 0 : i32
    return %c0_i32, %c0_i32_0 : i32, i32
  }
  func.func @transform_2(%arg0: i32) -> (i32, i32) {
    %c0_i32 = arith.constant 0 : i32
    %c0_i32_0 = arith.constant 0 : i32
    %c0_i32_1 = arith.constant 0 : i32
    return %c0_i32, %c0_i32_0 : i32, i32
  }
  func.func @transform_3(%arg0: i32) -> (i32, i32) {
    %c0_i32 = arith.constant 0 : i32
    %c0_i32_0 = arith.constant 0 : i32
    %c0_i32_1 = arith.constant 0 : i32
    return %c0_i32, %c0_i32_0 : i32, i32
  }
  func.func @transform_4(%arg0: i32) -> (i32, i32) {
    %c0_i32 = arith.constant 0 : i32
    %c0_i32_0 = arith.constant 0 : i32
    %c0_i32_1 = arith.constant 0 : i32
    return %c0_i32, %c0_i32_0 : i32, i32
  }
  func.func @transform_5(%arg0: i32) -> (i32, i32, i32) {
    %c0_i32 = arith.constant 0 : i32
    %c0_i32_0 = arith.constant 0 : i32
    %c0_i32_1 = arith.constant 0 : i32
    %c0_i32_2 = arith.constant 0 : i32
    return %c0_i32, %c0_i32_0, %c0_i32_1 : i32, i32, i32
  }
  func.func @transform_6(%arg0: i32) -> (i32, i32, i32) {
    %c0_i32 = arith.constant 0 : i32
    %c0_i32_0 = arith.constant 0 : i32
    %c0_i32_1 = arith.constant 0 : i32
    %c0_i32_2 = arith.constant 0 : i32
    return %c0_i32, %c0_i32_0, %c0_i32_1 : i32, i32, i32
  }
  func.func @transform_7(%arg0: i32) -> (i32, i32) {
    %c0_i32 = arith.constant 0 : i32
    %c0_i32_0 = arith.constant 0 : i32
    %c0_i32_1 = arith.constant 0 : i32
    return %c0_i32, %c0_i32_0 : i32, i32
  }
  func.func @transform_8(%arg0: i32) -> (i32, i32) {
    %c0_i32 = arith.constant 0 : i32
    %c0_i32_0 = arith.constant 0 : i32
    %c0_i32_1 = arith.constant 0 : i32
    return %c0_i32, %c0_i32_0 : i32, i32
  }
  func.func @transform_9(%arg0: i32) -> (i32, i32) {
    %c0_i32 = arith.constant 0 : i32
    %c0_i32_0 = arith.constant 0 : i32
    %c0_i32_1 = arith.constant 0 : i32
    return %c0_i32, %c0_i32_0 : i32, i32
  }
  func.func @transform_10(%arg0: i32) -> (i32, i32) {
    %c0_i32 = arith.constant 0 : i32
    %c0_i32_0 = arith.constant 0 : i32
    return %c0_i32, %arg0 : i32, i32
  }
}

</mosaic_0001>

<bundles_post_ra>
// kernel: selectglu_forward.1
= control target key start
LH: loop header
LB: loop body
LE: loop exit
PB: predicated region body
PF: predicated region fallthrough
CT: control target
= control target key end

     0   :  { %vm52_vm0 = vcmask 1043456   ;;  %v1168_v2 = vmov 0.0   ;;  %v1169_v5 = vmov 0   ;;  %vm48_vm1 = vcmask 31744   ;;  %s1170_s18 = smov 16   ;;  %s1171_s19 = smov 17   ;;  %s1740_s0 = inlined_call_operand.vmem [shape: f32[4,512], index: 0, kind: input, shape index: {}]   ;;  %s1741_s1 = inlined_call_operand.vmem [shape: f32[2,4], index: 1, kind: input, shape index: {}]   ;;  %s1742_s2 = inlined_call_operand.vmem [shape: f32[2,1], index: 2, kind: input, shape index: {}]   ;;  %s1743_s5 = inlined_call_operand.vmem [shape: f32[9,2,1], index: 5, kind: input, shape index: {}]   ;;  %s1744_s7 = inlined_call_operand.vmem [shape: f32[2,1], index: 7, kind: input, shape index: {}]   ;;  %s1745_s3 = inlined_call_operand.vmem [shape: f32[2,4], index: 3, kind: input, shape index: {}]   ;;  %s1746_s4 = inlined_call_operand.vmem [shape: f32[2,1], index: 4, kind: input, shape index: {}]   ;;  %s1747_s9 = inlined_call_operand.vmem [shape: f32[4,1], index: 9, kind: input, shape index: {}]   ;;  %s1748_s6 = inlined_call_operand.vmem [shape: f32[9,1,512], index: 6, kind: input, shape index: {}]   ;;  %s1749_s8 = inlined_call_operand.vmem [shape: f32[4,2], index: 8, kind: input, shape index: {}]   ;;  %s1750_s10 = inlined_call_operand.vmem [shape: f32[4,512], index: 10, kind: output, shape index: {}]  }
   0x1   :  { %v35_v0 = vld [vmem:[%s1740_s0] sm:$0xff]  ;;  %v36_v1 = vld [vmem:[%s1740_s0 + $0x8] sm:$0xff]  ;;  %125 = vmatprep.mubr.f32.mxu0 %v1168_v2  ;;  %196 = vmatprep.mubr.f32.mxu1 %v1168_v2  ;;  %v1129_v17 = vld [vmem:[%s1743_s5 + $0x10] sm:$0x3]  ;;  %s1173_s20 = smov 15   ;;  %s1174_s0 = smov 113   ;;  %v384_v48 = vlaneseq }
   0x2   :  { %v46_v3 = vcombine.high %v35_v0, %v35_v0  ;;  %v47_v4 = vcombine.high %v36_v1, %v36_v1  ;;  %1148 = vset.pattern.permute.xlu0 %v1169_v5  ;;  %v38_v6 = vld [vmem:[%s1742_s2] sm:$0x3]  ;;  %1149 = vset.pattern.permute.xlu1 %v1169_v5  ;;  %v1116_v8 = vld [vmem:[%s1743_s5 + $0x8] sm:$0x3]  ;;  %v1117_v10 = vld [vmem:[%s1743_s5 + $0x2] sm:$0x3] }
   0x3   :  { %v37_v7 = vld [vmem:[%s1741_s1] sm:$0x3]  ;;  %41 = vperm.xlu0 %1148, %v38_v6   ;;  %v1121_v12 = vld [vmem:[%s1743_s5 + $0x6] sm:$0x3]  ;;  %v1119_v13 = vld [vmem:[%s1743_s5 + $0x4] sm:$0x3] }
   0x4   :  { %1104 = vmatprep.subr.msk.mxu0 %vm52_vm0, %v46_v3  ;;  %1107 = vmatprep.subr.msk.mxu1 %vm52_vm0, %v47_v4  ;;  %v355_v9 = vld [vmem:[%s1744_s7] sm:$0x3]  ;;  %v1125_v15 = vld [vmem:[%s1743_s5 + $0xc] sm:$0x3]  ;;  %v1123_v16 = vld [vmem:[%s1743_s5 + $0xa] sm:$0x3] }
   0x5   :  { %1105 = vmatpush1.msk.msra.mxu0 %vm52_vm0, %v35_v0  ;;  %1108 = vmatpush1.msk.msra.mxu1 %vm52_vm0, %v36_v1  ;;  %v391_v11 = vld [vmem:[%s1743_s5] sm:$0x3]  ;;  %v1127_v18 = vld [vmem:[%s1743_s5 + $0xe] sm:$0x3]  ;;  %s1172_s5 = smov 1   ;;  %s1175_s21 = smov 127  }
   0x6   :  { %1106 = vmatmul.mubr.msk.f32.vlgmr.msra.gmra.mxu0 %vm48_vm1, %v37_v7  ;;  %1109 = vmatmul.mubr.msk.f32.vlgmr.msra.gmra.mxu1 %vm48_vm1, %v37_v7  ;;  %v203_v14 = vld [vmem:[%s1745_s3] sm:$0x3]  ;;  %s1176_s22 = smov 111   ;;  %s1177_s23 = smov 112   ;;  %v395_v51 = vshrl.u32 %v384_v48, 7  ;;  %v1363_v58 = vand.u32 127, %v384_v48 }
   0x7   :  { %360 = vperm.xlu0 %1148, %v1116_v8   ;;  %369 = vperm.xlu1 %1149, %v355_v9   ;;  %v204_v28 = vld [vmem:[%s1746_s4] sm:$0x3]  ;;  %v1397_v7 = vld [vmem:[%s1748_s6 + $0x8] sm:$0xf]  ;;  %vm935_vm14 = vcmask 1041408   ;;  %vm931_vm15 = vcmask 15360  }
   0x8   :  { %1110 = vmatprep.subr.msk.mxu0 %vm52_vm0, %v46_v3  ;;  %1113 = vmatprep.subr.msk.mxu1 %vm52_vm0, %v47_v4  ;;  %v925_v29 = vld [vmem:[%s1747_s9] sm:$0xf]  ;;  %v1365_v59 = vsub.s32 1, %v395_v51  ;;  %v1367_v60 = vsub.s32 2, %v395_v51  ;;  %v1369_v61 = vsub.s32 0, %v395_v51  ;;  %v1371_v62 = vsub.s32 3, %v395_v51 }
   0x9   :  { %1111 = vmatpush1.msk.msra.mxu0 %vm52_vm0, %v35_v0  ;;  %277 = vmatprep.mubr.f32.mxu0 %v1168_v2  ;;  %v392_v63 = vld [vmem:[%s1748_s6] sm:$0xf]  ;;  %vm386_vm2 = vcmp.lt.s32.totalorder %v1363_v58, 17  ;;  %vm439_vm3 = vcmp.lt.s32.totalorder %v1363_v58, 16  ;;  %vm494_vm4 = vcmp.lt.s32.totalorder %v1363_v58, 15  ;;  %vm549_vm5 = vcmp.lt.s32.totalorder %v1363_v58, 1 }
   0xa   :  { %1114 = vmatpush1.msk.msra.mxu1 %vm52_vm0, %v36_v1  ;;  %348 = vmatprep.mubr.f32.mxu1 %v1168_v2  ;;  %v1381_v1 = vld [vmem:[%s1748_s6 + $0x4] sm:$0xf]  ;;  %v401_v8 = vrot.slane %v392_v63, %v1365_v59  ;;  %v405_v9 = vrot.slane %v392_v63, %v1367_v60  ;;  %vm604_vm6 = vcmp.lt.s32.totalorder %v1363_v58, 127  ;;  %vm659_vm7 = vcmp.lt.s32.totalorder %v1363_v58, 113 }
   0xb   :  { %475 = vperm.xlu0 %1148, %v1117_v10   ;;  %420 = vperm.xlu1 %1149, %v391_v11   ;;  %v397_v10 = vrot.slane %v392_v63, %v1369_v61  ;;  %v409_v11 = vrot.slane %v392_v63, %v1371_v62  ;;  %vm714_vm8 = vcmp.lt.s32.totalorder %v1363_v58, 112  ;;  %vm769_vm9 = vcmp.lt.s32.totalorder %v1363_v58, 111 }
   0xc   :  { %1112 = vmatmul.mubr.msk.f32.vlgmr.msra.gmra.mxu0 %vm48_vm1, %v203_v14  ;;  %1115 = vmatmul.mubr.msk.f32.vlgmr.msra.gmra.mxu1 %vm48_vm1, %v203_v14  ;;  %v460_v14 = vrot.slane %v1381_v1, %v1367_v60 }
   0xd   :  { %1012 = vmatprep.mubr.f32.mxu0 %v1168_v2  ;;  %1083 = vmatprep.mubr.f32.mxu1 %v1168_v2 }
   0xf   :  { %585 = vperm.xlu0 %1148, %v1121_v12   ;;  %530 = vperm.xlu1 %1149, %v1119_v13   ;;  %v1406_v12 = vld [vmem:[%s1748_s6 + $0xc] sm:$0xf]  ;;  %v456_v13 = vrot.slane %v1381_v1, %v1365_v59 }
  0x13   :  { %695 = vperm.xlu0 %1148, %v1125_v15   ;;  %640 = vperm.xlu1 %1149, %v1123_v16   ;;  %v1417_v15 = vld [vmem:[%s1748_s6 + $0x14] sm:$0xf]  ;;  %v511_v16 = vrot.slane %v1397_v7, %v1365_v59 }
  0x17   :  { %805 = vperm.xlu0 %1148, %v1129_v17   ;;  %750 = vperm.xlu1 %1149, %v1127_v18   ;;  %v515_v17 = vrot.slane %v1397_v7, %v1367_v60  ;;  %v452_v18 = vrot.slane %v1381_v1, %v1369_v61 }
  0x7e   :  { %v42_v19 = vpop.permute.xlu0 %41 }
  0x82   :  { %v361_v30 = vpop.permute.xlu0 %360  ;;  %v370_v31 = vpop.permute.xlu1 %369 }
  0x86   :  { %v1321_v32 = vpop.permute.xlu0 %475  ;;  %v1323_v33 = vpop.permute.xlu1 %420 }
  0x8a   :  { %v1325_v34 = vpop.permute.xlu0 %585  ;;  %v1327_v35 = vpop.permute.xlu1 %530 }
  0x8e   :  { %v1329_v36 = vpop.permute.xlu0 %695  ;;  %v1331_v37 = vpop.permute.xlu1 %640 }
  0x92   :  { %v1333_v38 = vpop.permute.xlu0 %805  ;;  %v1335_v39 = vpop.permute.xlu1 %750 }
  0xc6   :  { %v127_v20 = vpop.f32.mrf.mxu0  ;;  %v198_v22 = vpop.f32.mrf.mxu1 }
  0xc7   :  { %v1291_v21 = vadd.f32 %v127_v20, %v42_v19  ;;  %v1296_v23 = vadd.f32 %v198_v22, %v42_v19  ;;  %v507_v22 = vrot.slane %v1397_v7, %v1369_v61 }
  0xc8   :  { %v129_v24 = vpop.f32.mrf.mxu0  ;;  %v200_v26 = vpop.f32.mrf.mxu1 }
  0xc9   :  { %431 = vrot.lane.b32.xlu1 %v1291_v21, %s1170_s18  ;;  %376 = vrot.lane.b32.xlu0 %v1291_v21, %s1171_s19  ;;  %v130_v25 = vadd.f32 %v129_v24, %v42_v19  ;;  %v201_v27 = vadd.f32 %v200_v26, %v42_v19  ;;  %v363_v52 = vmul.f32 %v361_v30, %v1291_v21  ;;  %v1440_v26 = vld [vmem:[%s1748_s6 + $0x18] sm:$0xf] }
  0xca   :  { %v365_v54 = vmul.f32 %v361_v30, %v1296_v23  ;;  %v464_v19 = vrot.slane %v1381_v1, %v1371_v62  ;;  %v566_v24 = vrot.slane %v1406_v12, %v1365_v59 }
  0xcb   :  { %v364_v53 = vmul.f32 %v361_v30, %v130_v25  ;;  %v366_v55 = vmul.f32 %v361_v30, %v201_v27  ;;  %v1376_v0 = vadd.f32 %v370_v31, %v363_v52 }
  0xcc   :  { %v1385_v3 = vadd.f32 %v370_v31, %v365_v54  ;;  %v1492_v54 = vld [vmem:[%s1748_s6 + $0x20] sm:$0xf] }
  0xcd   :  { %435 = vrot.lane.b32.xlu1 %v1296_v23, %s1170_s18  ;;  %380 = vrot.lane.b32.xlu0 %v1296_v23, %s1171_s19  ;;  %v1383_v2 = vadd.f32 %v370_v31, %v364_v53  ;;  %v1387_v4 = vadd.f32 %v370_v31, %v366_v55  ;;  %v1455_v31 = vld [vmem:[%s1748_s6 + $0x1c] sm:$0xf] }
  0xce   :  { %v735_v30 = vrot.slane %v1455_v31, %v1367_v60 }
  0xd1   :  { %541 = vrot.lane.b32.xlu1 %v1291_v21, %s1172_s5  ;;  %486 = vrot.lane.b32.xlu0 %v1291_v21, %s1173_s20 }
  0xd5   :  { %545 = vrot.lane.b32.xlu1 %v1296_v23, %s1172_s5  ;;  %490 = vrot.lane.b32.xlu0 %v1296_v23, %s1173_s20 }
  0xd9   :  { %651 = vrot.lane.b32.xlu1 %v1291_v21, %s1174_s0  ;;  %596 = vrot.lane.b32.xlu0 %v1291_v21, %s1175_s21 }
  0xdd   :  { %655 = vrot.lane.b32.xlu1 %v1296_v23, %s1174_s0  ;;  %600 = vrot.lane.b32.xlu0 %v1296_v23, %s1175_s21 }
  0xe1   :  { %761 = vrot.lane.b32.xlu1 %v1291_v21, %s1176_s22  ;;  %706 = vrot.lane.b32.xlu0 %v1291_v21, %s1177_s23 }
  0xe5   :  { %378 = vrot.lane.b32.xlu1 %v130_v25, %s1171_s19  ;;  %710 = vrot.lane.b32.xlu0 %v1296_v23, %s1177_s23 }
  0xe9   :  { %382 = vrot.lane.b32.xlu1 %v201_v27, %s1171_s19  ;;  %433 = vrot.lane.b32.xlu0 %v130_v25, %s1170_s18 }
  0xed   :  { %488 = vrot.lane.b32.xlu1 %v130_v25, %s1173_s20  ;;  %437 = vrot.lane.b32.xlu0 %v201_v27, %s1170_s18 }
  0xf1   :  { %492 = vrot.lane.b32.xlu1 %v201_v27, %s1173_s20  ;;  %543 = vrot.lane.b32.xlu0 %v130_v25, %s1172_s5 }
  0xf5   :  { %598 = vrot.lane.b32.xlu1 %v130_v25, %s1175_s21  ;;  %547 = vrot.lane.b32.xlu0 %v201_v27, %s1172_s5 }
  0xf9   :  { %602 = vrot.lane.b32.xlu1 %v201_v27, %s1175_s21  ;;  %653 = vrot.lane.b32.xlu0 %v130_v25, %s1174_s0 }
  0xfd   :  { %708 = vrot.lane.b32.xlu1 %v130_v25, %s1177_s23  ;;  %657 = vrot.lane.b32.xlu0 %v201_v27, %s1174_s0 }
 0x101   :  { %712 = vrot.lane.b32.xlu1 %v201_v27, %s1177_s23  ;;  %763 = vrot.lane.b32.xlu0 %v130_v25, %s1176_s22 }
 0x105   :  { %765 = vrot.lane.b32.xlu1 %v1296_v23, %s1176_s22  ;;  %767 = vrot.lane.b32.xlu0 %v201_v27, %s1176_s22  ;;  %v519_v23 = vrot.slane %v1397_v7, %v1371_v62 }
 0x109   :  { %207 = vperm.xlu1 %1149, %v204_v28   ;;  %928 = vperm.xlu0 %1148, %v925_v29  }
 0x13b   :  { %v1337_v40 = vpop.permute.xlu1 %431  ;;  %v1339_v41 = vpop.permute.xlu0 %376 }
 0x13f   :  { %v1341_v42 = vpop.permute.xlu1 %435  ;;  %v1343_v43 = vpop.permute.xlu0 %380 }
 0x143   :  { %v1345_v44 = vpop.permute.xlu1 %541  ;;  %v1347_v45 = vpop.permute.xlu0 %486 }
 0x147   :  { %v1349_v46 = vpop.permute.xlu1 %545  ;;  %v1351_v47 = vpop.permute.xlu0 %490 }
 0x14b   :  { %v1353_v49 = vpop.permute.xlu1 %651  ;;  %v1355_v50 = vpop.permute.xlu0 %596 }
 0x14f   :  { %v1359_v56 = vpop.permute.xlu1 %655  ;;  %v1361_v57 = vpop.permute.xlu0 %600 }
 0x153   :  { %v1389_v5 = vpop.permute.xlu1 %761  ;;  %v1391_v6 = vpop.permute.xlu0 %706 }
 0x157   :  { %v379_v20 = vpop.permute.xlu1 %378  ;;  %v1427_v21 = vpop.permute.xlu0 %710 }
 0x158   :  { %v388_v27 = vsel %vm386_vm2, %v379_v20, %v1343_v43  ;;  %v389_v28 = vsel %vm386_vm2, %v1339_v41, %v379_v20 }
 0x159   :  { %v415_v48 = vmul.f32 %v401_v8, %v389_v28  ;;  %v416_v51 = vmul.f32 %v405_v9, %v388_v27 }
 0x15b   :  { %v424_v9 = vmul.f32 %v1323_v33, %v415_v48  ;;  %v383_v20 = vpop.permute.xlu1 %382  ;;  %v434_v27 = vpop.permute.xlu0 %433  ;;  %v425_v53 = vmul.f32 %v1323_v33, %v416_v51 }
 0x15c   :  { %v387_v63 = vsel %vm386_vm2, %v1343_v43, %v383_v20  ;;  %v390_v8 = vsel %vm386_vm2, %v383_v20, %v1339_v41  ;;  %v441_v48 = vsel %vm439_vm3, %v434_v27, %v1341_v42  ;;  %v442_v28 = vsel %vm439_vm3, %v1337_v40, %v434_v27 }
 0x15d   :  { %v414_v43 = vmul.f32 %v397_v10, %v390_v8  ;;  %v417_v55 = vmul.f32 %v409_v11, %v387_v63  ;;  %v684_v41 = vrot.slane %v1440_v26, %v1371_v62  ;;  %v470_v20 = vmul.f32 %v456_v13, %v442_v28 }
 0x15e   :  { %v471_v52 = vmul.f32 %v460_v14, %v441_v48  ;;  %v739_v27 = vrot.slane %v1455_v31, %v1371_v62  ;;  %v782_v11 = vrot.slane %v1492_v54, %v1369_v61  ;;  %v428_v14 = vadd.f32 %v424_v9, %v1383_v2 }
 0x15f   :  { %v423_v29 = vmul.f32 %v1323_v33, %v414_v43  ;;  %v426_v25 = vmul.f32 %v1323_v33, %v417_v55  ;;  %v489_v51 = vpop.permute.xlu1 %488  ;;  %v438_v10 = vpop.permute.xlu0 %437  ;;  %v790_v33 = vrot.slane %v1492_v54, %v1367_v60  ;;  %v429_v55 = vadd.f32 %v425_v53, %v1385_v3 }
 0x160   :  { %v496_v63 = vsel %vm494_vm4, %v489_v51, %v1351_v47  ;;  %v497_v8 = vsel %vm494_vm4, %v1347_v45, %v489_v51  ;;  %v479_v28 = vmul.f32 %v1321_v32, %v470_v20  ;;  %v480_v9 = vmul.f32 %v1321_v32, %v471_v52 }
 0x161   :  { %v525_v48 = vmul.f32 %v511_v16, %v497_v8  ;;  %v526_v43 = vmul.f32 %v515_v17, %v496_v63  ;;  %v427_v2 = vadd.f32 %v423_v29, %v1376_v0  ;;  %v440_v13 = vsel %vm439_vm3, %v1341_v42, %v438_v10 }
 0x162   :  { %v443_v51 = vsel %vm439_vm3, %v438_v10, %v1337_v40  ;;  %v430_v3 = vadd.f32 %v426_v25, %v1387_v4  ;;  %v472_v0 = vmul.f32 %v464_v19, %v440_v13  ;;  %v483_v1 = vadd.f32 %v479_v28, %v428_v14 }
 0x163   :  { %v534_v53 = vmul.f32 %v1327_v35, %v525_v48  ;;  %v469_v16 = vmul.f32 %v452_v18, %v443_v51  ;;  %v493_v17 = vpop.permute.xlu1 %492  ;;  %v544_v29 = vpop.permute.xlu0 %543  ;;  %v535_v19 = vmul.f32 %v1327_v35, %v526_v43  ;;  %v1751_v10 = vrot.slane %v1406_v12, %v1367_v60 }
 0x164   :  { %v495_v42 = vsel %vm494_vm4, %v1351_v47, %v493_v17  ;;  %v498_v40 = vsel %vm494_vm4, %v493_v17, %v1347_v45  ;;  %v551_v4 = vsel %vm549_vm5, %v544_v29, %v1349_v46  ;;  %v552_v18 = vsel %vm549_vm5, %v1345_v44, %v544_v29 }
 0x165   :  { %v478_v25 = vmul.f32 %v1321_v32, %v469_v16  ;;  %v481_v52 = vmul.f32 %v1321_v32, %v472_v0  ;;  %v524_v47 = vmul.f32 %v507_v22, %v498_v40  ;;  %v527_v45 = vmul.f32 %v519_v23, %v495_v42 }
 0x166   :  { %v580_v20 = vmul.f32 %v566_v24, %v552_v18  ;;  %v581_v13 = vmul.f32 %v1751_v10, %v551_v4  ;;  %v484_v14 = vadd.f32 %v480_v9, %v429_v55  ;;  %v538_v32 = vadd.f32 %v534_v53, %v483_v1 }
 0x167   :  { %v482_v63 = vadd.f32 %v478_v25, %v427_v2  ;;  %v599_v8 = vpop.permute.xlu1 %598  ;;  %v548_v28 = vpop.permute.xlu0 %547  ;;  %v794_v22 = vrot.slane %v1492_v54, %v1371_v62  ;;  %v485_v7 = vadd.f32 %v481_v52, %v430_v3  ;;  %v533_v23 = vmul.f32 %v1327_v35, %v524_v47 }
 0x168   :  { %v536_v48 = vmul.f32 %v1327_v35, %v527_v45  ;;  %v589_v24 = vmul.f32 %v1325_v34, %v580_v20  ;;  %v606_v43 = vsel %vm604_vm6, %v599_v8, %v1361_v57  ;;  %v607_v55 = vsel %vm604_vm6, %v1355_v50, %v599_v8 }
 0x169   :  { %v550_v2 = vsel %vm549_vm5, %v1349_v46, %v548_v28  ;;  %v553_v9 = vsel %vm549_vm5, %v548_v28, %v1345_v44  ;;  %v539_v51 = vadd.f32 %v535_v19, %v484_v14  ;;  %v537_v35 = vadd.f32 %v533_v23, %v482_v63 }
 0x16a   :  { %v540_v3 = vadd.f32 %v536_v48, %v485_v7  ;;  %v590_v53 = vmul.f32 %v1325_v34, %v581_v13  ;;  %v1752_v16 = vrot.slane %v1417_v15, %v1369_v61  ;;  %v1753_v17 = vrot.slane %v1417_v15, %v1365_v59 }
 0x16b   :  { %v1754_v46 = vrot.slane %v1406_v12, %v1369_v61  ;;  %v1755_v44 = vrot.slane %v1406_v12, %v1371_v62  ;;  %v603_v4 = vpop.permute.xlu1 %602  ;;  %v654_v18 = vpop.permute.xlu0 %653  ;;  %v593_v52 = vadd.f32 %v589_v24, %v538_v32  ;;  %v1758_v14 = vrot.slane %v1440_v26, %v1369_v61 }
 0x16c   :  { %v634_v0 = vmul.f32 %v1752_v16, %v607_v55  ;;  %v635_v29 = vmul.f32 %v1753_v17, %v606_v43  ;;  %v605_v1 = vsel %vm604_vm6, %v1361_v57, %v603_v4  ;;  %v608_v19 = vsel %vm604_vm6, %v603_v4, %v1355_v50 }
 0x16d   :  { %v579_v42 = vmul.f32 %v1754_v46, %v553_v9  ;;  %v582_v40 = vmul.f32 %v1755_v44, %v550_v2  ;;  %v661_v25 = vsel %vm659_vm7, %v654_v18, %v1359_v56  ;;  %v662_v12 = vsel %vm659_vm7, %v1353_v49, %v654_v18 }
 0x16e   :  { %v644_v47 = vmul.f32 %v1331_v37, %v635_v29  ;;  %v1756_v57 = vrot.slane %v1417_v15, %v1367_v60  ;;  %v1757_v50 = vrot.slane %v1417_v15, %v1371_v62  ;;  %v689_v63 = vmul.f32 %v1758_v14, %v662_v12 }
 0x16f   :  { %v588_v45 = vmul.f32 %v1325_v34, %v579_v42  ;;  %v591_v20 = vmul.f32 %v1325_v34, %v582_v40  ;;  %v1759_v32 = vrot.slane %v1440_v26, %v1365_v59  ;;  %v594_v28 = vadd.f32 %v590_v53, %v539_v51  ;;  %v709_v48 = vpop.permute.xlu1 %708  ;;  %v658_v24 = vpop.permute.xlu0 %657 }
 0x170   :  { %v636_v10 = vmul.f32 %v1756_v57, %v605_v1  ;;  %v637_v13 = vmul.f32 %v1757_v50, %v608_v19  ;;  %v643_v7 = vmul.f32 %v1331_v37, %v634_v0  ;;  %v648_v34 = vadd.f32 %v644_v47, %v593_v52 }
 0x171   :  { %v690_v8 = vmul.f32 %v1759_v32, %v661_v25  ;;  %v592_v23 = vadd.f32 %v588_v45, %v537_v35  ;;  %v595_v43 = vadd.f32 %v591_v20, %v540_v3  ;;  %v698_v15 = vmul.f32 %v1329_v36, %v689_v63 }
 0x172   :  { %v645_v55 = vmul.f32 %v1331_v37, %v636_v10  ;;  %v716_v16 = vsel %vm714_vm8, %v709_v48, %v1427_v21  ;;  %v717_v51 = vsel %vm714_vm8, %v1391_v6, %v709_v48  ;;  %v660_v35 = vsel %vm659_vm7, %v1359_v56, %v658_v24 }
 0x173   :  { %v699_v2 = vmul.f32 %v1329_v36, %v690_v8  ;;  %v647_v9 = vadd.f32 %v643_v7, %v592_v23  ;;  %v646_v3 = vmul.f32 %v1331_v37, %v637_v13  ;;  %v1760_v17 = vrot.slane %v1455_v31, %v1369_v61  ;;  %v713_v37 = vpop.permute.xlu1 %712  ;;  %v764_v18 = vpop.permute.xlu0 %763 }
 0x174   :  { %v649_v53 = vadd.f32 %v645_v55, %v594_v28  ;;  %v1761_v42 = vrot.slane %v1455_v31, %v1365_v59  ;;  %v663_v40 = vsel %vm659_vm7, %v658_v24, %v1353_v49  ;;  %v1762_v56 = vrot.slane %v1440_v26, %v1367_v60 }
 0x175   :  { %v703_v0 = vadd.f32 %v699_v2, %v648_v34  ;;  %v744_v29 = vmul.f32 %v1760_v17, %v717_v51  ;;  %v702_v46 = vadd.f32 %v698_v15, %v647_v9  ;;  %v692_v19 = vmul.f32 %v684_v41, %v663_v40 }
 0x176   :  { %v745_v44 = vmul.f32 %v1761_v42, %v716_v16  ;;  %v691_v4 = vmul.f32 %v1762_v56, %v660_v35  ;;  %v715_v25 = vsel %vm714_vm8, %v1427_v21, %v713_v37  ;;  %v718_v49 = vsel %vm714_vm8, %v713_v37, %v1391_v6 }
 0x177   :  { %v753_v1 = vmul.f32 %v1335_v39, %v744_v29  ;;  %v746_v47 = vmul.f32 %v735_v30, %v715_v25  ;;  %v747_v26 = vmul.f32 %v739_v27, %v718_v49  ;;  %v650_v41 = vadd.f32 %v646_v3, %v595_v43  ;;  %v766_v13 = vpop.permute.xlu1 %765  ;;  %v768_v30 = vpop.permute.xlu0 %767 }
 0x178   :  { %v754_v12 = vmul.f32 %v1335_v39, %v745_v44  ;;  %v700_v52 = vmul.f32 %v1329_v36, %v691_v4  ;;  %v701_v21 = vmul.f32 %v1329_v36, %v692_v19  ;;  %v772_v6 = vsel %vm769_vm9, %v1389_v5, %v764_v18 }
 0x179   :  { %v757_v45 = vadd.f32 %v753_v1, %v702_v46  ;;  %v755_v10 = vmul.f32 %v1335_v39, %v746_v47  ;;  %v756_v50 = vmul.f32 %v1335_v39, %v747_v26  ;;  %v799_v31 = vmul.f32 %v782_v11, %v772_v6 }
 0x17a   :  { %v758_v20 = vadd.f32 %v754_v12, %v703_v0  ;;  %v704_v57 = vadd.f32 %v700_v52, %v649_v53  ;;  %v705_v14 = vadd.f32 %v701_v21, %v650_v41  ;;  %v771_v36 = vsel %vm769_vm9, %v764_v18, %v766_v13 }
 0x17b   :  { %v770_v27 = vsel %vm769_vm9, %v766_v13, %v768_v30  ;;  %v1763_v32 = vrot.slane %v1492_v54, %v1365_v59  ;;  %v773_v39 = vsel %vm769_vm9, %v768_v30, %v1389_v5  ;;  %v808_v28 = vmul.f32 %v1333_v38, %v799_v31 }
 0x17c   :  { %v759_v63 = vadd.f32 %v755_v10, %v704_v57  ;;  %v801_v61 = vmul.f32 %v790_v33, %v770_v27  ;;  %v760_v11 = vadd.f32 %v756_v50, %v705_v14  ;;  %v802_v7 = vmul.f32 %v794_v22, %v773_v39 }
 0x17d   :  { %v800_v8 = vmul.f32 %v1763_v32, %v771_v36  ;;  %v1694_v23 = vadd.f32 %v808_v28, %v757_v45 }
 0x17e   :  { %v810_v59 = vmul.f32 %v1333_v38, %v801_v61  ;;  %v811_v58 = vmul.f32 %v1333_v38, %v802_v7 }
 0x17f   :  { %v809_v34 = vmul.f32 %v1333_v38, %v800_v8  ;;  %v1702_v60 = vmul.f32 0.70710677, %v1694_v23 }
 0x180   :  { %v1699_v48 = vadd.f32 %v810_v59, %v759_v63  ;;  %v1704_v33 = vadd.f32 %v811_v58, %v760_v11 }
 0x181   :  { %v1697_v5 = vadd.f32 %v809_v34, %v758_v20  ;;  %v832_v22 = vand.u32 2147483647, %v1702_v60  ;;  %vm824_vm10 = vcmp.ge.f32.partialorder %v1702_v60, 0.0 }
 0x182   :  { %v1710_v54 = vmul.f32 0.70710677, %v1699_v48  ;;  %v1714_v24 = vmul.f32 0.70710677, %v1704_v33 }
 0x183   :  { %v1707_v62 = vmul.f32 0.70710677, %v1697_v5  ;;  %v836_v55 = vmul.f32 0.3275911, %v832_v22  ;;  %v884_v0 = vsub.f32 0.0, %v832_v22 }
 0x184   :  { %v834_v43 = vand.u32 2147483647, %v1710_v54  ;;  %v835_v15 = vand.u32 2147483647, %v1714_v24  ;;  %vm826_vm12 = vcmp.ge.f32.partialorder %v1710_v54, 0.0  ;;  %vm827_vm13 = vcmp.ge.f32.partialorder %v1714_v24, 0.0 }
 0x185   :  { %v833_v38 = vand.u32 2147483647, %v1707_v62  ;;  %v840_v16 = vadd.f32 1.0, %v836_v55  ;;  %v888_v29 = vmul.f32 %v884_v0, %v832_v22  ;;  %vm825_vm11 = vcmp.ge.f32.partialorder %v1707_v62, 0.0 }
 0x186   :  { %v838_v9 = vmul.f32 0.3275911, %v834_v43  ;;  %v839_v51 = vmul.f32 0.3275911, %v835_v15  ;;  %v886_v46 = vsub.f32 0.0, %v834_v43  ;;  %v887_v44 = vsub.f32 0.0, %v835_v15 }
 0x187   :  { %v837_v2 = vmul.f32 0.3275911, %v833_v38  ;;  %1152 = vrcp.f32 %v840_v16  ;;  %v885_v17 = vsub.f32 0.0, %v833_v38  ;;  %v892_v4 = vmul.f32 1.442695, %v888_v29 }
 0x188   :  { %v842_v3 = vadd.f32 1.0, %v838_v9  ;;  %v843_v53 = vadd.f32 1.0, %v839_v51  ;;  %v890_v37 = vmul.f32 %v886_v46, %v834_v43  ;;  %v891_v19 = vmul.f32 %v887_v44, %v835_v15 }
 0x189   :  { %v841_v35 = vadd.f32 1.0, %v837_v2  ;;  %v889_v42 = vmul.f32 %v885_v17, %v833_v38  ;;  %v1178_v29 = vmov -1.0  }
 0x18a   :  { %v896_v26 = vmul.f32 1.442695, %v890_v37  ;;  %v898_v21 = vmul.f32 1.442695, %v891_v19  ;;  %v828_v46 = vsel %vm824_vm10, 1.0, %v1178_v29  ;;  %v350_v37 = vpop.f32.mrf.mxu1  ;;  %v831_v54 = vsel %vm827_vm13, 1.0, %v1178_v29 }
 0x18b   :  { %1154 = vrcp.f32 %v841_v35  ;;  %v894_v1 = vmul.f32 1.442695, %v889_v42 }
 0x18c   :  { %1156 = vrcp.f32 %v842_v3  ;;  %v279_v3 = vpop.f32.mrf.mxu0 }
 0x18d   :  { %1158 = vrcp.f32 %v843_v53 }
 0x18e   :  { %1160 = vpow2.f32 %v892_v4  ;;  %v281_v19 = vpop.f32.mrf.mxu0 }
 0x18f   :  { %1162 = vpow2.f32 %v894_v1  ;;  %v816_v1 = vmul.f32 0.5, %v1694_v23 }
 0x190   :  { %1164 = vpow2.f32 %v896_v26 }
 0x191   :  { %1166 = vpow2.f32 %v898_v21 }
 0x194   :  { %v1153_v40 = vpop.eup %1152 }
 0x195   :  { %v848_v18 = vmul.f32 1.0614054, %v1153_v40 }
 0x197   :  { %v852_v49 = vadd.f32 -1.4531521, %v848_v18 }
 0x198   :  { %v1155_v56 = vpop.eup %1154 }
 0x199   :  { %v849_v25 = vmul.f32 1.0614054, %v1155_v56  ;;  %v1157_v12 = vpop.eup %1156  ;;  %v856_v45 = vmul.f32 %v1153_v40, %v852_v49 }
 0x19a   :  { %v1159_v47 = vpop.eup %1158  ;;  %v850_v41 = vmul.f32 1.0614054, %v1157_v12 }
 0x19b   :  { %v853_v52 = vadd.f32 -1.4531521, %v849_v25  ;;  %v851_v6 = vmul.f32 1.0614054, %v1159_v47  ;;  %v860_v10 = vadd.f32 1.4214138, %v856_v45  ;;  %v1161_v43 = vpop.eup %1160  ;;  %v208_v25 = vpop.permute.xlu1 %207 }
 0x19c   :  { %v854_v57 = vadd.f32 -1.4531521, %v850_v41  ;;  %v1163_v2 = vpop.eup %1162 }
 0x19d   :  { %v857_v20 = vmul.f32 %v1155_v56, %v853_v52  ;;  %v855_v50 = vadd.f32 -1.4531521, %v851_v6  ;;  %v864_v14 = vmul.f32 %v1153_v40, %v860_v10  ;;  %v1165_v17 = vpop.eup %1164  ;;  %v817_v52 = vmul.f32 0.5, %v1697_v5  ;;  %v352_v10 = vpop.f32.mrf.mxu1 }
 0x19e   :  { %v858_v30 = vmul.f32 %v1157_v12, %v854_v57  ;;  %v282_v6 = vadd.f32 %v281_v19, %v208_v25  ;;  %v818_v57 = vmul.f32 0.5, %v1699_v48  ;;  %v351_v5 = vadd.f32 %v350_v37, %v208_v25 }
 0x19f   :  { %v861_v13 = vadd.f32 1.4214138, %v857_v20  ;;  %v859_v31 = vmul.f32 %v1159_v47, %v855_v50  ;;  %v868_v63 = vadd.f32 -0.28449672, %v864_v14  ;;  %v280_v50 = vadd.f32 %v279_v3, %v208_v25 }
 0x1a0   :  { %v862_v27 = vadd.f32 1.4214138, %v858_v30 }
 0x1a1   :  { %v865_v36 = vmul.f32 %v1155_v56, %v861_v13  ;;  %v863_v32 = vadd.f32 1.4214138, %v859_v31  ;;  %v872_v61 = vmul.f32 %v1153_v40, %v868_v63  ;;  %v819_v13 = vmul.f32 0.5, %v1704_v33 }
 0x1a2   :  { %v866_v39 = vmul.f32 %v1157_v12, %v862_v27  ;;  %v924_v27 = vld [vmem:[%s1749_s8] sm:$0xf]  ;;  %v353_v63 = vadd.f32 %v352_v10, %v208_v25 }
 0x1a3   :  { %v869_v8 = vadd.f32 -0.28449672, %v865_v36  ;;  %v867_v11 = vmul.f32 %v1159_v47, %v863_v32  ;;  %v876_v34 = vadd.f32 0.2548296, %v872_v61 }
 0x1a4   :  { %v870_v7 = vadd.f32 -0.28449672, %v866_v39  ;;  %v929_v39 = vpop.permute.xlu0 %928 }
 0x1a5   :  { %v873_v28 = vmul.f32 %v1155_v56, %v869_v8  ;;  %v871_v59 = vadd.f32 -0.28449672, %v867_v11  ;;  %v880_v38 = vmul.f32 %v1153_v40, %v876_v34  ;;  %v1167_v40 = vpop.eup %1166 }
 0x1a6   :  { %v874_v22 = vmul.f32 %v1157_v12, %v870_v7 }
 0x1a7   :  { %v877_v58 = vadd.f32 0.2548296, %v873_v28  ;;  %v875_v55 = vmul.f32 %v1159_v47, %v871_v59  ;;  %v900_v16 = vmul.f32 %v1161_v43, %v880_v38 }
 0x1a8   :  { %v878_v9 = vadd.f32 0.2548296, %v874_v22 }
 0x1a9   :  { %v881_v15 = vmul.f32 %v1155_v56, %v877_v58  ;;  %v879_v51 = vadd.f32 0.2548296, %v875_v55  ;;  %v904_v0 = vsub.f32 1.0, %v900_v16  ;;  %v829_v56 = vsel %vm825_vm11, 1.0, %v1178_v29 }
 0x1aa   :  { %v882_v53 = vmul.f32 %v1157_v12, %v878_v9 }
 0x1ab   :  { %v901_v35 = vmul.f32 %v1163_v2, %v881_v15  ;;  %v883_v42 = vmul.f32 %v1159_v47, %v879_v51  ;;  %v908_v60 = vmul.f32 %v904_v0, %v828_v46  ;;  %v830_v47 = vsel %vm826_vm12, 1.0, %v1178_v29 }
 0x1ac   :  { %v902_v4 = vmul.f32 %v1165_v17, %v882_v53 }
 0x1ad   :  { %v905_v44 = vsub.f32 1.0, %v901_v35  ;;  %v903_v62 = vmul.f32 %v1167_v40, %v883_v42  ;;  %v912_v12 = vadd.f32 1.0, %v908_v60 }
 0x1ae   :  { %v906_v49 = vsub.f32 1.0, %v902_v4 }
 0x1af   :  { %v909_v18 = vmul.f32 %v905_v44, %v829_v56  ;;  %v907_v26 = vsub.f32 1.0, %v903_v62  ;;  %v916_v21 = vmul.f32 %v912_v12, %v816_v1 }
 0x1b0   :  { %v910_v45 = vmul.f32 %v906_v49, %v830_v47 }
 0x1b1   :  { %v913_v41 = vadd.f32 1.0, %v909_v18  ;;  %v911_v20 = vmul.f32 %v907_v26, %v831_v54  ;;  %v920_v36 = vmul.f32 %v916_v21, %v280_v50 }
 0x1b2   :  { %v914_v23 = vadd.f32 1.0, %v910_v45 }
 0x1b3   :  { %v917_v24 = vmul.f32 %v913_v41, %v817_v52  ;;  %v915_v30 = vadd.f32 1.0, %v911_v20 }
 0x1b4   :  { %v918_v31 = vmul.f32 %v914_v23, %v818_v57 }
 0x1b5   :  { %v921_v14 = vmul.f32 %v917_v24, %v282_v6  ;;  %v919_v32 = vmul.f32 %v915_v30, %v819_v13 }
 0x1b6   :  { %v922_v48 = vmul.f32 %v918_v31, %v351_v5 }
 0x1b7   :  { %1131 = vmatprep.subr.msk.mxu0 %vm935_vm14, %v921_v14  ;;  %v923_v8 = vmul.f32 %v919_v32, %v353_v63 }
 0x1b8   :  { %1132 = vmatpush1.msk.msra.mxu0 %vm935_vm14, %v920_v36 }
 0x1b9   :  { %1133 = vmatmul.mubr.msk.f32.vlgmr.msra.gmra.mxu0 %vm931_vm15, %v924_v27  ;;  %1134 = vmatprep.subr.msk.mxu1 %vm935_vm14, %v923_v8 }
 0x1ba   :  { %1135 = vmatpush1.msk.msra.mxu1 %vm935_vm14, %v922_v48 }
 0x1bb   :  { %1136 = vmatmul.mubr.msk.f32.vlgmr.msra.gmra.mxu1 %vm931_vm15, %v924_v27 }
 0x279   :  { %v1014_v33 = vpop.f32.mrf.mxu0 }
 0x27a   :  { %v1015_v11 = vadd.f32 %v1014_v33, %v929_v39 }
 0x27b   :  { %v1016_v61 = vpop.f32.mrf.mxu0  ;;  %v1085_v7 = vpop.f32.mrf.mxu1 }
 0x27c   :  { %v1017_v28 = vadd.f32 %v1016_v61, %v929_v39  ;;  %v1086_v58 = vadd.f32 %v1085_v7, %v929_v39 }
 0x27d   :  { %v1087_v59 = vpop.f32.mrf.mxu1 }
 0x27e   :  { %v1094_v34 = vcombine.low %v1015_v11, %v1017_v28  ;;  %v1088_v22 = vadd.f32 %v1087_v59, %v929_v39 }
 0x280   :  { %1098 = vst [vmem:[%s1750_s10] sm:$0xff] %v1094_v34  ;;  %v1095_v38 = vcombine.low %v1086_v58, %v1088_v22 }
 0x282   :  { %1099 = vst [vmem:[%s1750_s10 + $0x8] sm:$0xff] %v1095_v38 }

</bundles_post_ra>
